<compile_context>
chip_gen: v6e
topology: v6e:2x2x1
jax: 0.10.0
libtpu: 0.0.40
codegen_flags: <defaults>
</compile_context>

<pallas_src>
import functools

import jax
import jax.numpy as jnp
from jax.experimental import pallas as pl
from jax.experimental.pallas import tpu as pltpu

LAM = 1e-3  # synthetic regularizer weight: reg(x) = LAM * sum(x**2)


# ----------------------------------------------------------------------------
# helpers
# ----------------------------------------------------------------------------
def _round_up(a, m):
    return (a + m - 1) // m * m


def _tau_smem(tau):
    return jnp.asarray(tau, jnp.float32).reshape(-1)[:1]   # (1,) scalar for SMEM


def _pick_images_per_block(n, image_bytes, target_bytes=512 * 1024):
    """Largest divisor of n whose block stays <= target_bytes while keeping at
    least two parallel grid blocks (v7x has 2 TensorCores)."""
    min_blocks = 2 if n >= 2 else 1
    nb = 1
    for d in range(1, n + 1):
        if n % d == 0 and n // d >= min_blocks and d * image_bytes <= target_bytes:
            nb = d
    return nb


# ----------------------------------------------------------------------------
# Fused kernel builder: all n_iter gradient steps in one pallas_call.
# ----------------------------------------------------------------------------
@functools.lru_cache(maxsize=None)
def _build_fused_call(num_blocks, n_iter, nb, hp, wp, h0, w0):
    """Images are stacked along the sublane axis, so one block is (nb*hp, wp)
    f32 and the separable 3x3 blur is two masked 2-D sublane/lane rolls.
    (hp, wp) = padded image dims, (h0, w0) = true image dims."""
    rows = nb * hp
    padded_h = hp != h0
    padded_w = wp != w0

    def kernel(tau_ref, x_ref, y_ref, out_ref, acc_ref):
        k = pl.program_id(1)

        # First iteration for this image block: load x into the VMEM carry.
        @pl.when(k == 0)
        def _():
            acc_ref[...] = x_ref[...]

        xi = acc_ref[...]

        # ---- boundary masks: built once per body, reused by both blurs ----
        ih = jax.lax.broadcasted_iota(jnp.int32, (rows, wp), 0)
        iw = jax.lax.broadcasted_iota(jnp.int32, (rows, wp), 1)
        # per-image "has an upper/lower neighbor" masks; images sit every hp
        # rows on the sublane axis (nb is a small static constant, unrolled).
        h_lo = ih != 0
        h_hi = ih != hp - 1
        for m in range(1, nb):
            h_lo = h_lo & (ih != m * hp)
            h_hi = h_hi & (ih != (m + 1) * hp - 1)
        w_lo = iw != 0
        w_hi = iw != wp - 1

        valid = None                       # validity mask for zero-padded dims
        if padded_h:
            vh = ih < h0
            for m in range(1, nb):
                vh = vh | ((ih >= m * hp) & (ih < m * hp + h0))
            valid = vh
        if padded_w:
            vw = iw < w0
            valid = vw if valid is None else (valid & vw)

        def nsum(v, axis, lo, hi):
            # s[j] = v[j-1] + v[j+1], out-of-image neighbors treated as zero:
            # masked XLU rolls only (no single-lane extracts / broadcasts).
            n = v.shape[axis]
            return (jnp.where(lo, pltpu.roll(v, 1, axis), 0.0)
                    + jnp.where(hi, pltpu.roll(v, n - 1, axis), 0.0))

        def blur(v):
            # A v with A = conv([[1,2,1],[2,4,2],[1,2,1]]/16), zero 'SAME' pad
            t = 0.5 * v + 0.25 * nsum(v, 0, h_lo, h_hi)
            return 0.5 * t + 0.25 * nsum(t, 1, w_lo, w_hi)

        r = blur(xi) - y_ref[...]              # operator(x) - y
        if valid is not None:
            r = jnp.where(valid, r, 0.0)       # zero residual in the pad ring
        g = blur(r) + (2.0 * LAM) * xi         # adjoint(r) + d reg / dx
        xn = xi - tau_ref[0] * g               # x + (-tau * grad)
        if valid is not None:
            xn = jnp.where(valid, xn, 0.0)     # keep the pad ring at zero

        acc_ref[...] = xn                      # carry to the next iteration
        out_ref[...] = xn                      # k-th entry of x_list

    img_spec = pl.BlockSpec((rows, wp), lambda i, k: (i, 0))   # invariant in k
    return pl.pallas_call(
        kernel,
        grid=(num_blocks, n_iter),
        in_specs=[pl.BlockSpec(memory_space=pltpu.MemorySpace.SMEM),  # tau
                  img_spec,                                           # x
                  img_spec],                                          # y
        out_specs=pl.BlockSpec((None, rows, wp), lambda i, k: (k, i, 0)),
        out_shape=jax.ShapeDtypeStruct((n_iter, num_blocks * rows, wp),
                                       jnp.float32),
        scratch_shapes=[pltpu.VMEM((rows, wp), jnp.float32)],
        compiler_params=pltpu.CompilerParams(
            dimension_semantics=("parallel", "arbitrary"),
            vmem_limit_bytes=32 * 1024 * 1024,
        ),
    )


def fused_const_tau_iters(x, y, tau, n_iter):
    """x, y: (N, H, W) f32 -> (n_iter, N, H, W): every iterate of
    x <- x - tau * grad_x f(x, y) for the built-in objective, computed by a
    single fused pallas_call (x and y read from HBM once per image block)."""
    n, h0, w0 = x.shape
    hp, wp = _round_up(h0, 8), _round_up(w0, 128)
    if (hp, wp) != (h0, w0):
        # Lane/sublane-align with zeros; the kernel masks the residual/update
        # so the valid region matches the unpadded gradient exactly.
        pad = ((0, 0), (0, hp - h0), (0, wp - w0))
        x = jnp.pad(x, pad)
        y = jnp.pad(y, pad)
    nb = _pick_images_per_block(n, hp * wp * 4)
    # TODO(synk): very large single images (block >> VMEM budget) would need
    # an H-tiled variant with 1-row halos; not required at these sizes.
    call = _build_fused_call(n // nb, int(n_iter), nb, hp, wp, h0, w0)
    out = call(_tau_smem(tau), x.reshape(n * hp, wp), y.reshape(n * hp, wp))
    out = out.reshape(n_iter, n, hp, wp)
    if (hp, wp) != (h0, w0):
        out = out[:, :, :h0, :w0]
    return out


# ----------------------------------------------------------------------------
# Synthetic operator / objective (glue; user-supplied in the PyTorch module).
# ----------------------------------------------------------------------------
_BLUR_K = jnp.array([[1., 2., 1.], [2., 4., 2.], [1., 2., 1.]], jnp.float32) / 16.0


def operator_apply(x):
    """x: (N, H, W) -> (N, H, W).  TODO(synk): `operator` is user-supplied."""
    out = jax.lax.conv_general_dilated(
        x[:, None], _BLUR_K[None, None], (1, 1), ((1, 1), (1, 1)))
    return out[:, 0]


def f_obj(x, y):
    """TODO(synk): `f` / `reg` are user-supplied; synthetic quadratic here."""
    r = operator_apply(x) - y
    return 0.5 * jnp.sum(r * r) + LAM * jnp.sum(x * x)


# ----------------------------------------------------------------------------
# ConstTauModel.forward
# ----------------------------------------------------------------------------
def const_tau_model_forward(tau, x, y, n_iter=1, f=None):
    """Mirrors ConstTauModel.forward(f, x, y, n_iter).

    x, y: (B, C, H, W); tau: the (1,1,1,1) parameter (or a scalar).
    f is None  -> built-in objective, ONE fused Pallas call for all n_iter steps.
    f is given -> grad via jax.grad (mirror of torch.autograd.grad) and an
                  XLA-fused x - tau*grad update (no extra Pallas launch).
    """
    b, c, h, w = x.shape
    n = b * c
    tau_list = [tau] * n_iter
    if f is not None:
        xf, yf = x.reshape(n, h, w), y.reshape(n, h, w)
        t = jnp.reshape(jnp.asarray(tau, jnp.float32), ())
        grad_fn = jax.grad(f, argnums=0)
        x_list = []
        for _ in range(n_iter):
            xf = xf - t * grad_fn(xf, yf)     # mirrors torch.autograd.grad
            x_list.append(xf.reshape(b, c, h, w))
        return x_list[-1], tau_list, x_list

    xs = fused_const_tau_iters(x.reshape(n, h, w), y.reshape(n, h, w), tau, n_iter)
    x_list = [xs[k].reshape(b, c, h, w) for k in range(n_iter)]
    return x_list[-1], tau_list, x_list


if __name__ == "__main__":
    key = jax.random.PRNGKey(0)
    tau = 0.12 * jnp.ones((1, 1, 1, 1), jnp.float32)   # nn.Parameter(0.12*ones)

    def reference_iterates(x0, y, tau, n_iter):
        b, c, h, w = x0.shape
        xr, yr = x0.reshape(b * c, h, w), y.reshape(b * c, h, w)
        gfn = jax.grad(f_obj, argnums=0)
        t = jnp.reshape(jnp.asarray(tau, jnp.float32), ())
        out = []
        for _ in range(n_iter):
            xr = xr - t * gfn(xr, yr)
            out.append(xr.reshape(b, c, h, w))
        return out

    # ---- Test 1: lane/sublane-aligned shapes, one image per block ----------
    B, C, H, W = 2, 1, 64, 128
    k1, k2, k3, k4 = jax.random.split(key, 4)
    x0 = jax.random.normal(k1, (B, C, H, W), jnp.float32)
    x_true = jax.random.normal(k2, (B, C, H, W), jnp.float32)
    y = operator_apply(x_true.reshape(B * C, H, W)).reshape(B, C, H, W)
    n_iter = 3

    x_fast, tau_list, x_list = const_tau_model_forward(tau, x0, y, n_iter=n_iter)
    jax.block_until_ready(x_fast)
    assert x_fast.shape == (B, C, H, W)
    assert len(x_list) == n_iter and len(tau_list) == n_iter
    assert tau_list[0].shape == (1, 1, 1, 1)

    xs_ref = reference_iterates(x0, y, tau, n_iter)
    for it, (xa, xb) in enumerate(zip(x_list, xs_ref)):
        err = float(jnp.max(jnp.abs(xa - xb)))
        assert err < 1e-4, f"fused iterate {it} mismatch vs jax.grad ref: {err}"

    # Generic (black-box f) path.
    x_gen, _, _ = const_tau_model_forward(tau, x0, y, n_iter=n_iter, f=f_obj)
    jax.block_until_ready(x_gen)
    err_gen = float(jnp.max(jnp.abs(x_gen - xs_ref[-1])))
    assert err_gen < 1e-5, f"generic-path mismatch vs jax.grad reference: {err_gen}"

    # ---- Test 2: misaligned H/W (zero-pad path) + 2 images fused per block --
    B2, C2, H2, W2 = 2, 2, 20, 96
    x0b = jax.random.normal(k3, (B2, C2, H2, W2), jnp.float32)
    x_trueb = jax.random.normal(k4, (B2, C2, H2, W2), jnp.float32)
    yb = operator_apply(x_trueb.reshape(B2 * C2, H2, W2)).reshape(B2, C2, H2, W2)
    n_iter2 = 2

    x_fast2, _, x_list2 = const_tau_model_forward(tau, x0b, yb, n_iter=n_iter2)
    jax.block_until_ready(x_fast2)
    xs_ref2 = reference_iterates(x0b, yb, tau, n_iter2)
    for it, (xa, xb) in enumerate(zip(x_list2, xs_ref2)):
        err = float(jnp.max(jnp.abs(xa - xb)))
        assert err < 1e-4, f"padded/fused-block iterate {it} mismatch: {err}"

    print("KERNEL_OK")
</pallas_src>

<mosaic_0001>
module attributes {stable_mosaic.version = 11 : i64} {
  func.func @kernel(%arg0: i32, %arg1: i32, %arg2: memref<1xf32, #tpu.memory_space<smem>>, %arg3: memref<64x128xf32, #tpu.memory_space<vmem>>, %arg4: memref<64x128xf32, #tpu.memory_space<vmem>>, %arg5: memref<1x64x128xf32, #tpu.memory_space<vmem>>, %arg6: memref<64x128xf32, #tpu.memory_space<vmem>>) attributes {dimension_semantics = [#tpu.dimension_semantics<parallel>, #tpu.dimension_semantics<arbitrary>], iteration_bounds = array<i64: 2, 3>, scalar_prefetch = 0 : i64, scratch_operands = 1 : i64, tpu.core_type = #tpu.core_type<tc>, window_params = [{transform_indices = @transform_0, window_bounds = array<i64: 1>}, {transform_indices = @transform_1, window_bounds = array<i64: 64, 128>}, {transform_indices = @transform_2, window_bounds = array<i64: 64, 128>}, {transform_indices = @transform_3, window_bounds = array<i64: 1, 64, 128>}]} {
    %c0_i32 = arith.constant 0 : i32
    %0 = arith.cmpi eq, %arg1, %c0_i32 : i32
    %1 = arith.extui %0 : i1 to i32
    %c0_i32_0 = arith.constant 0 : i32
    %2 = arith.cmpi ne, %1, %c0_i32_0 : i32
    scf.if %2 {
      %c0_35 = arith.constant 0 : index
      %c0_36 = arith.constant 0 : index
      %75 = vector.load %arg3[%c0_35, %c0_36] : memref<64x128xf32, #tpu.memory_space<vmem>>, vector<64x128xf32>
      %c0_37 = arith.constant 0 : index
      %c0_38 = arith.constant 0 : index
      %76 = vector.load %arg6[%c0_37, %c0_38] : memref<64x128xf32, #tpu.memory_space<vmem>>, vector<64x128xf32>
      tpu.vector_store %arg6[%c0_37, %c0_38], %75 {strides = array<i32>} : memref<64x128xf32, #tpu.memory_space<vmem>>, vector<64x128xf32>,
    } else {
    }
    %c0 = arith.constant 0 : index
    %c0_1 = arith.constant 0 : index
    %3 = vector.load %arg6[%c0, %c0_1] : memref<64x128xf32, #tpu.memory_space<vmem>>, vector<64x128xf32>
    %4 = tpu.iota {dimensions = array<i32: 0>} : vector<64x128xi32>
    %5 = tpu.iota {dimensions = array<i32: 1>} : vector<64x128xi32>
    %c0_i32_2 = arith.constant 0 : i32
    %6 = vector.broadcast %c0_i32_2 : i32 to vector<64x128xi32>
    %7 = arith.cmpi ne, %4, %6 : vector<64x128xi32>
    %c63_i32 = arith.constant 63 : i32
    %8 = vector.broadcast %c63_i32 : i32 to vector<64x128xi32>
    %9 = arith.cmpi ne, %4, %8 : vector<64x128xi32>
    %c0_i32_3 = arith.constant 0 : i32
    %10 = vector.broadcast %c0_i32_3 : i32 to vector<64x128xi32>
    %11 = arith.cmpi ne, %5, %10 : vector<64x128xi32>
    %c127_i32 = arith.constant 127 : i32
    %12 = vector.broadcast %c127_i32 : i32 to vector<64x128xi32>
    %13 = arith.cmpi ne, %5, %12 : vector<64x128xi32>
    %cst = arith.constant 5.000000e-01 : f32
    %14 = vector.broadcast %cst : f32 to vector<64x128xf32>
    %15 = arith.mulf %14, %3 : vector<64x128xf32>
    %c1_i32 = arith.constant 1 : i32
    %16 = tpu.dynamic_rotate %3 by %c1_i32 dim 0 : vector<64x128xf32>, i32 -> vector<64x128xf32>
    %cst_4 = arith.constant 0.000000e+00 : f32
    %17 = vector.broadcast %cst_4 : f32 to vector<64x128xf32>
    %18 = arith.select %7, %16, %17 : vector<64x128xi1>, vector<64x128xf32>
    %c63_i32_5 = arith.constant 63 : i32
    %19 = tpu.dynamic_rotate %3 by %c63_i32_5 dim 0 : vector<64x128xf32>, i32 -> vector<64x128xf32>
    %cst_6 = arith.constant 0.000000e+00 : f32
    %20 = vector.broadcast %cst_6 : f32 to vector<64x128xf32>
    %21 = arith.select %9, %19, %20 : vector<64x128xi1>, vector<64x128xf32>
    %22 = arith.addf %18, %21 : vector<64x128xf32>
    %cst_7 = arith.constant 2.500000e-01 : f32
    %23 = vector.broadcast %cst_7 : f32 to vector<64x128xf32>
    %24 = arith.mulf %23, %22 : vector<64x128xf32>
    %25 = arith.addf %15, %24 : vector<64x128xf32>
    %cst_8 = arith.constant 5.000000e-01 : f32
    %26 = vector.broadcast %cst_8 : f32 to vector<64x128xf32>
    %27 = arith.mulf %26, %25 : vector<64x128xf32>
    %c1_i32_9 = arith.constant 1 : i32
    %28 = tpu.dynamic_rotate %25 by %c1_i32_9 dim 1 : vector<64x128xf32>, i32 -> vector<64x128xf32>
    %cst_10 = arith.constant 0.000000e+00 : f32
    %29 = vector.broadcast %cst_10 : f32 to vector<64x128xf32>
    %30 = arith.select %11, %28, %29 : vector<64x128xi1>, vector<64x128xf32>
    %c127_i32_11 = arith.constant 127 : i32
    %31 = tpu.dynamic_rotate %25 by %c127_i32_11 dim 1 : vector<64x128xf32>, i32 -> vector<64x128xf32>
    %cst_12 = arith.constant 0.000000e+00 : f32
    %32 = vector.broadcast %cst_12 : f32 to vector<64x128xf32>
    %33 = arith.select %13, %31, %32 : vector<64x128xi1>, vector<64x128xf32>
    %34 = arith.addf %30, %33 : vector<64x128xf32>
    %cst_13 = arith.constant 2.500000e-01 : f32
    %35 = vector.broadcast %cst_13 : f32 to vector<64x128xf32>
    %36 = arith.mulf %35, %34 : vector<64x128xf32>
    %37 = arith.addf %27, %36 : vector<64x128xf32>
    %c0_14 = arith.constant 0 : index
    %c0_15 = arith.constant 0 : index
    %38 = vector.load %arg4[%c0_14, %c0_15] : memref<64x128xf32, #tpu.memory_space<vmem>>, vector<64x128xf32>
    %39 = arith.subf %37, %38 : vector<64x128xf32>
    %cst_16 = arith.constant 5.000000e-01 : f32
    %40 = vector.broadcast %cst_16 : f32 to vector<64x128xf32>
    %41 = arith.mulf %40, %39 : vector<64x128xf32>
    %c1_i32_17 = arith.constant 1 : i32
    %42 = tpu.dynamic_rotate %39 by %c1_i32_17 dim 0 : vector<64x128xf32>, i32 -> vector<64x128xf32>
    %cst_18 = arith.constant 0.000000e+00 : f32
    %43 = vector.broadcast %cst_18 : f32 to vector<64x128xf32>
    %44 = arith.select %7, %42, %43 : vector<64x128xi1>, vector<64x128xf32>
    %c63_i32_19 = arith.constant 63 : i32
    %45 = tpu.dynamic_rotate %39 by %c63_i32_19 dim 0 : vector<64x128xf32>, i32 -> vector<64x128xf32>
    %cst_20 = arith.constant 0.000000e+00 : f32
    %46 = vector.broadcast %cst_20 : f32 to vector<64x128xf32>
    %47 = arith.select %9, %45, %46 : vector<64x128xi1>, vector<64x128xf32>
    %48 = arith.addf %44, %47 : vector<64x128xf32>
    %cst_21 = arith.constant 2.500000e-01 : f32
    %49 = vector.broadcast %cst_21 : f32 to vector<64x128xf32>
    %50 = arith.mulf %49, %48 : vector<64x128xf32>
    %51 = arith.addf %41, %50 : vector<64x128xf32>
    %cst_22 = arith.constant 5.000000e-01 : f32
    %52 = vector.broadcast %cst_22 : f32 to vector<64x128xf32>
    %53 = arith.mulf %52, %51 : vector<64x128xf32>
    %c1_i32_23 = arith.constant 1 : i32
    %54 = tpu.dynamic_rotate %51 by %c1_i32_23 dim 1 : vector<64x128xf32>, i32 -> vector<64x128xf32>
    %cst_24 = arith.constant 0.000000e+00 : f32
    %55 = vector.broadcast %cst_24 : f32 to vector<64x128xf32>
    %56 = arith.select %11, %54, %55 : vector<64x128xi1>, vector<64x128xf32>
    %c127_i32_25 = arith.constant 127 : i32
    %57 = tpu.dynamic_rotate %51 by %c127_i32_25 dim 1 : vector<64x128xf32>, i32 -> vector<64x128xf32>
    %cst_26 = arith.constant 0.000000e+00 : f32
    %58 = vector.broadcast %cst_26 : f32 to vector<64x128xf32>
    %59 = arith.select %13, %57, %58 : vector<64x128xi1>, vector<64x128xf32>
    %60 = arith.addf %56, %59 : vector<64x128xf32>
    %cst_27 = arith.constant 2.500000e-01 : f32
    %61 = vector.broadcast %cst_27 : f32 to vector<64x128xf32>
    %62 = arith.mulf %61, %60 : vector<64x128xf32>
    %63 = arith.addf %53, %62 : vector<64x128xf32>
    %cst_28 = arith.constant 2.000000e-03 : f32
    %64 = vector.broadcast %cst_28 : f32 to vector<64x128xf32>
    %65 = arith.mulf %64, %3 : vector<64x128xf32>
    %66 = arith.addf %63, %65 : vector<64x128xf32>
    %c0_29 = arith.constant 0 : index
    %67 = memref.load %arg2[%c0_29] : memref<1xf32, #tpu.memory_space<smem>>
    %68 = vector.broadcast %67 : f32 to vector<64x128xf32>
    %69 = arith.mulf %68, %66 : vector<64x128xf32>
    %70 = arith.subf %3, %69 : vector<64x128xf32>
    %c0_30 = arith.constant 0 : index
    %c0_31 = arith.constant 0 : index
    %71 = vector.load %arg6[%c0_30, %c0_31] : memref<64x128xf32, #tpu.memory_space<vmem>>, vector<64x128xf32>
    tpu.vector_store %arg6[%c0_30, %c0_31], %70 {strides = array<i32>} : memref<64x128xf32, #tpu.memory_space<vmem>>, vector<64x128xf32>,
    %c0_32 = arith.constant 0 : index
    %c0_33 = arith.constant 0 : index
    %c0_34 = arith.constant 0 : index
    %72 = vector.load %arg5[%c0_32, %c0_33, %c0_34] : memref<1x64x128xf32, #tpu.memory_space<vmem>>, vector<1x64x128xf32>
    %73 = vector.shape_cast %72 : vector<1x64x128xf32> to vector<64x128xf32>
    %74 = vector.shape_cast %70 : vector<64x128xf32> to vector<1x64x128xf32>
    tpu.vector_store %arg5[%c0_32, %c0_33, %c0_34], %74 {strides = array<i32>} : memref<1x64x128xf32, #tpu.memory_space<vmem>>, vector<1x64x128xf32>,
    return
  }
  func.func @transform_0(%arg0: i32, %arg1: i32) -> i32 {
    %c0_i32 = arith.constant 0 : i32
    %c0_i32_0 = arith.constant 0 : i32
    return %c0_i32 : i32
  }
  func.func @transform_1(%arg0: i32, %arg1: i32) -> (i32, i32) {
    %c0_i32 = arith.constant 0 : i32
    %c0_i32_0 = arith.constant 0 : i32
    return %arg0, %c0_i32 : i32, i32
  }
  func.func @transform_2(%arg0: i32, %arg1: i32) -> (i32, i32) {
    %c0_i32 = arith.constant 0 : i32
    %c0_i32_0 = arith.constant 0 : i32
    return %arg0, %c0_i32 : i32, i32
  }
  func.func @transform_3(%arg0: i32, %arg1: i32) -> (i32, i32, i32) {
    %c0_i32 = arith.constant 0 : i32
    %c0_i32_0 = arith.constant 0 : i32
    return %arg1, %arg0, %c0_i32 : i32, i32, i32
  }
}

</mosaic_0001>

<bundles_post_ra>
// kernel: tpu_custom_call.1
= control target key start
LH: loop header
LB: loop body
LE: loop exit
PB: predicated region body
PF: predicated region fallthrough
CT: control target
= control target key end

     0   :  { %s1738_s0 = inlined_call_operand.<no memory space> [shape: f32[1], index: 0, kind: input, shape index: {}]   ;;  %s1739_s1 = inlined_call_operand.hbm [shape: f32[128,128], index: 1, kind: input, shape index: {}]   ;;  %s1740_s2 = inlined_call_operand.hbm [shape: f32[128,128], index: 2, kind: input, shape index: {}]   ;;  %s1741_s3 = inlined_call_operand.hbm [shape: f32[3,128,128], index: 3, kind: output, shape index: {}]  }
   0x1   :  { %1747 = sst [smem:[#allocation18_spill]] %s1739_s1 }
   0x2   :  { %8 = sst [smem:[#allocation3]] %s1738_s0 }
   0x3   :  { %9 = vsyncpa [#allocation5], 0 }
   0x4   :  { %11 = vsyncpa [#allocation5 + $0x1], 0 }
   0x5   :  { %12 = vsyncpa [#allocation8], 0 }
   0x6   :  { %14 = vsyncpa [#allocation8 + $0x1], 0 }
   0x7   :  { %15 = vsyncpa [#allocation6], 0 }
   0x8   :  { %17 = vsyncpa [#allocation6 + $0x1], 0  ;;  %s1168_s14 = smov 0   ;;  %s1170_s15 = smov 0  }
   0x9   :  { %s1172_s16 = smov 0   ;;  %s1174_s17 = smov 0  }
   0xa   :  { %s1176_s18 = smov 0   ;;  %s1178_s19 = smov 0  }
   0xb   :  { %s1180_s20 = smov 0   ;;  %s1182_s0 = smov 0  }
   0xc   :  { %s1184_s21 = smov 0   ;;  %s1186_s22 = smov 0  }
   0xd   :  { %s1188_s23 = smov 0  }
   0xe LB: > { %1748 = sst [smem:[#allocation13_spill]] %s1114_s19  ;;  %s818_s24 = sadd.s32 4294967295, %s1134_s23   ;;  %s1134_s23 = sphi %s1188_s23, %s23_s23   ;;  %s1130_s22 = sphi %s1186_s22, %s1772_s22   ;;  %s1126_s21 = sphi %s1184_s21, %s1764_s21   ;;  %s1122_s0 = sphi %s1182_s0, %s1771_s0   ;;  %s1118_s20 = sphi %s1180_s20, %s1763_s20   ;;  %s1114_s19 = sphi %s1178_s19, %s1762_s19   ;;  %s1110_s18 = sphi %s1176_s18, %s1770_s18   ;;  %s1106_s17 = sphi %s1174_s17, %s1769_s17   ;;  %s1102_s16 = sphi %s1172_s16, %s1768_s16   ;;  %s1098_s15 = sphi %s1170_s15, %s1767_s15   ;;  %s1094_s14 = sphi %s1168_s14, %s1766_s14  }
   0xf   : > { %1749 = sst [smem:[#allocation14_spill]] %s1126_s21  ;;  %s819_s25 = sadd.s32 4294967294, %s1134_s23  }
  0x10   : > { %s32_s26 = sadd.s32 1, %s1126_s21  ;;  %s35_s27 = sadd.s32 1, %s1130_s22 }
  0x11   : > { %p33_p0 = scmp.ge.s32.totalorder %s32_s26, 3  ;;  %s63_s28 = sadd.s32 1, %s1114_s19 }
  0x12   : > { %p70_p1 = scmp.ne.s32.totalorder %s1114_s19, %s1110_s18  ;;  %p71_p2 = scmp.eq.s32.totalorder %s1134_s23, 0 }
  0x13   : > { %s1774_s26 = smov (%p33_p0, %s32_s26), 0  ;;  %s1776_s27 = smov (!%p33_p0, %s35_s27), %s1130_s22 }
  0x14   : > { %1750 = sst [smem:[#allocation15_spill]] %s1774_s26  ;;  %p1232_p3 = por %p71_p2, %p70_p1 }
  0x15   : > { %p76_p4 = scmp.ne.s32.totalorder %s1110_s18, %s1106_s17  ;;  %p37_p5 = scmp.ge.s32.totalorder %s1776_s27, 2 }
  0x16   : > { %p77_p6 = scmp.eq.s32.totalorder %s818_s24, 0  ;;  %s112_s30 = ssub.s32 %s1126_s21, %s1774_s26 }
  0x17   : > { %s117_s4 = sadd.s32 1, %s1102_s16  ;;  %s1778_s27 = smov (%p37_p5, %s1776_s27), 0 }
  0x18   : > { %1752 = sst [smem:[#allocation16_spill]] %s1778_s27  ;;  %p1242_p7 = por %p77_p6, %p76_p4 }
  0x19   : > { %p127_p8 = scmp.ne.s32.totalorder %s1102_s16, %s1098_s15  ;;  %s60_s6 = ssub.s32 %s1130_s22, %s1778_s27 }
  0x1a   : > { %p128_p9 = scmp.eq.s32.totalorder %s818_s24, 5  ;;  %p61_p10 = scmp.eq.s32.totalorder %s60_s6, 0 }
  0x1b   : > { %s114_s7 = sor.u32 %s112_s30, %s60_s6  ;;  %p133_p13 = scmp.ne.s32.totalorder %s1098_s15, %s1094_s14 }
  0x1c   : > { %p115_p11 = scmp.eq.s32.totalorder %s114_s7, 0  ;;  %p1250_p12 = por %p128_p9, %p127_p8 }
  0x1d   : > { %s1255_s9 = scalar_select %p61_p10, %s1114_s19, %s63_s28  }
  0x1e   : > { %s1258_s10 = scalar_select %p115_p11, %s1102_s16, %s117_s4  }
  0x1f   : > { %1755 = sst [smem:[#allocation17_spill]] %s1255_s9  ;;  %p134_p0 = scmp.eq.s32.totalorder %s819_s25, 5 }
  0x20   : > { %p858_p1 = scmp.lt.s32.totalorder %s1134_s23, 6  ;;  %s1268_s12 = sand.u32 1, %s1114_s19  }
  0x21   : > { %p1263_p2 = por %p134_p0, %p133_p13  ;;  %s1743_s13 = sshll.u32 %s1268_s12, 6 }
  0x22   : > { %s839_s17 = sshll.u32 %s1130_s22, 10  ;;  %s1757_s1 = sld [smem:[#allocation18_spill]] }
  0x23   : > { %s161_s4 = scalar_lea.vmem [#allocation4], %s1743_s13  ;;  %p1281_p4 = pnand %p858_p1, %p1232_p3 }
  0x24   : > { %s168_s25 = sshll.u32 %s161_s4, 4  ;;  %p828_p5 = scmp.ge.s32.totalorder %s1134_s23, 1  ;;  %s169_s25 = int_to_ptr.vmem [resolvable:$true] %s168_s25 }
  0x25   : > { %s158_s7 = scalar_lea.sflag [#allocation5], %s1268_s12  ;;  %p956_p6 = pneg %p1281_p4 }
  0x26   : > { %s967_s27 = scalar_lea.vmem %s169_s25, 1024  ;;  %s1136_s24 = smov [#allocation4]  }
  0x27   : > { %p968_p8 = scmp.ne.s32.totalorder %s169_s25, %s967_s27  ;;  %s972_s28 = sshll.u32 %s1136_s24, 4  ;;  %s973_s28 = int_to_ptr.vmem [resolvable:$false] %s972_s28 }
  0x28   : > { %s167_s30 = scalar_lea.hbm %s1757_s1, %s839_s17  ;;  %s974_s29 = scalar_lea.vmem %s973_s28, 2048 }
  0x29   : > { %p970_p9 = pnand %p968_p8, %p956_p6  ;;  %p975_p3 = scmp.lt.s32.totalorder %s169_s25, %s973_s28 }
  0x2a   : > { %p976_p11 = scmp.lt.s32.totalorder %s974_s29, %s967_s27 }
  0x2b   : > { %p971_p10 = pneg %p970_p9 }
  0x2c   : > { %p977_p13 = por %p976_p11, %p975_p3 }
  0x2e   : > { %p978_p0 = pnand %p977_p13, %p971_p10 }
  0x30   : > { %981 = shalt.err (!%p978_p0)
}
  0x31   : > { %s1137_s4 = smov 128   ;;  %s1138_s13 = smov 8  }
  0x32   : > { %850 = dma.hbm_to_vmem [thread:$0]  (!%p1281_p4), %s167_s30, 1024, %s169_s25, %s158_s7, %s1137_s4, %s1137_s4, %s1138_s13  }
  0x33   : > { %p197_p1 = scmp.lt.s32.totalorder %s1134_s23, 7  ;;  %s188_s27 = scalar_lea.hbm %s1740_s2, %s839_s17 }
  0x34   : > { %s1760_s29 = sshll.u32 %s1268_s12, 6  ;;  %s179_s9 = scalar_lea.sflag [#allocation8], %s1268_s12 }
  0x35   : > { %p1302_p8 = pnand %p828_p5, %p197_p1  ;;  %s182_s26 = scalar_lea.vmem [#allocation7], %s1760_s29 }
  0x36   : > { %s189_s21 = sshll.u32 %s182_s26, 4  ;;  %s1139_s30 = smov [#allocation7]   ;;  %s190_s21 = int_to_ptr.vmem [resolvable:$true] %s189_s21 }
  0x37   : > { %s995_s19 = scalar_lea.vmem %s190_s21, 1024  ;;  %s1000_s25 = sshll.u32 %s1139_s30, 4  ;;  %s1001_s25 = int_to_ptr.vmem [resolvable:$false] %s1000_s25 }
  0x38   : > { %p996_p9 = scmp.ne.s32.totalorder %s190_s21, %s995_s19  ;;  %s1002_s1 = scalar_lea.vmem %s1001_s25, 2048 }
  0x39   : > { %p1003_p11 = scmp.lt.s32.totalorder %s190_s21, %s1001_s25  ;;  %p1004_p5 = scmp.lt.s32.totalorder %s1002_s1, %s995_s19 }
  0x3a   : > { %p998_p10 = pnand %p996_p9, %p956_p6 }
  0x3b   : > { %p1005_p13 = por %p1004_p5, %p1003_p11 }
  0x3c   : > { %p999_p3 = pneg %p998_p10 }
  0x3e   : > { %p1006_p0 = pnand %p1005_p13, %p999_p3 }
  0x40   : > { %1009 = shalt.err (!%p1006_p0)
}
  0x41   : > { %853 = dma.hbm_to_vmem [thread:$0]  (!%p1281_p4), %s188_s27, 1024, %s190_s21, %s179_s9, %s1137_s4, %s1137_s4, %s1138_s13  }
  0x42   : > { %201 = sbr.rel (%p1302_p8) target bundleno = 430 (0x1ae), region = 32  ;;  %s203_s26 = sand.u32 (!%p1302_p8), 1, %s1110_s18  }
  0x43   : > { %s829_s12 = sshll.u32 (!%p1302_p8), %s203_s26, 6  ;;  %s204_s17 = scalar_lea.sflag (!%p1302_p8), [#allocation5], %s203_s26 }
  0x44   : > { %s207_s7 = scalar_lea.vmem (!%p1302_p8), [#allocation4], %s829_s12 }
  0x47   : > { %1081 = dma.done.wait (%p1242_p7), %s204_s17, 1024  }
  0x48   : > { %1083 = vsyncadd (%p1242_p7), %s204_s17, 4294966272  ;;  %s213_s19 = scalar_lea.sflag [#allocation8], %s203_s26  ;;  %s1321_s24 = scalar_lea.vmem [#allocation7], %s829_s12 }
  0x49   : > { %1085 = dma.done.wait (%p1242_p7), %s213_s19, 1024  }
  0x4a   : > { %1087 = vsyncadd (%p1242_p7), %s213_s19, 4294966272  ;;  %s241_s21 = sand.u32 1, %s1098_s15   ;;  %p832_p4 = scmp.ne.s32.totalorder %s1118_s20, 0 }
  0x4b   : > { %s831_s9 = sshll.u32 %s241_s21, 6 }
  0x4c   : > { %s1330_s13 = scalar_lea.vmem [#allocation9], %s831_s9  ;;  %250 = sbr.rel (%p832_p4) target bundleno = 86 (0x56), region = 44 }
  0x51   : > { %v251_v0 = vld [vmem:[%s207_s7] sm:$0xff]  ;;  %v252_v1 = vld [vmem:[%s207_s7 + $0x8] sm:$0xff]  ;;  %v253_v2 = vld [vmem:[%s207_s7 + $0x10] sm:$0xff] }
  0x52   : > { %259 = vst [vmem:[#allocation2 + $0x30] sm:$0xff] %v251_v0  ;;  %260 = vst [vmem:[#allocation2] sm:$0xff] %v252_v1  ;;  %v254_v3 = vld [vmem:[%s207_s7 + $0x18] sm:$0xff]  ;;  %v255_v4 = vld [vmem:[%s207_s7 + $0x20] sm:$0xff] }
  0x53   : > { %261 = vst [vmem:[#allocation2 + $0x18] sm:$0xff] %v253_v2  ;;  %v256_v5 = vld [vmem:[%s207_s7 + $0x28] sm:$0xff]  ;;  %262 = vst [vmem:[#allocation2 + $0x10] sm:$0xff] %v254_v3  ;;  %v257_v6 = vld [vmem:[%s207_s7 + $0x30] sm:$0xff] }
  0x54   : > { %263 = vst [vmem:[#allocation2 + $0x8] sm:$0xff] %v255_v4  ;;  %264 = vst [vmem:[#allocation2 + $0x20] sm:$0xff] %v256_v5  ;;  %v258_v7 = vld [vmem:[%s207_s7 + $0x38] sm:$0xff] }
  0x55   : > { %265 = vst [vmem:[#allocation2 + $0x28] sm:$0xff] %v257_v6  ;;  %266 = vst [vmem:[#allocation2 + $0x38] sm:$0xff] %v258_v7 }
  0x56 PF: > { %v275_v11 = vlaneseq  ;;  %s1140_s5 = smov 1   ;;  %s1141_s6 = smov 127  }
  0x57   : > { %s658_s4 = sld [smem:[#allocation3]]  ;;  %s834_s27 = sshll.u32 %s1122_s0, 3 }
  0x58   : > { %v1347_v17 = vshrl.u32 %v275_v11, 7  ;;  %s835_s28 = sshll.u32 %s1118_s20, 4  ;;  %s708_s20 = sshll.u32 %s1330_s13, 4  ;;  %s1665_s20 = int_to_ptr.vmem [resolvable:$true] %s708_s20 }
  0x59   : > { %v1333_v8 = vld [vmem:[#allocation2] sm:$0xff]  ;;  %v1342_v15 = vld [vmem:[#allocation2 + $0x30] sm:$0xff]  ;;  %s705_s29 = sadd.s32 %s835_s28, %s834_s27  ;;  %s1678_s26 = scalar_lea.sflag [#allocation6], %s241_s21 }
  0x5a   : > { %v1335_v9 = vld [vmem:[#allocation2 + $0x18] sm:$0xff]  ;;  %v1337_v10 = vld [vmem:[#allocation2 + $0x10] sm:$0xff]  ;;  %v313_v12 = vrot.slane %v1333_v8, 7  ;;  %v312_v20 = vrot.slane %v1342_v15, 7  ;;  %v305_v22 = vmul.f32 0.5, %v1333_v8  ;;  %v338_v23 = vrot.slane %v1333_v8, 1 }
  0x5b   : > { %v314_v13 = vrot.slane %v1335_v9, 7  ;;  %v339_v14 = vrot.slane %v1335_v9, 1  ;;  %v1344_v16 = vld [vmem:[#allocation2 + $0x8] sm:$0xff]  ;;  %v306_v18 = vmul.f32 0.5, %v1335_v9  ;;  %v340_v19 = vrot.slane %v1337_v10, 1  ;;  %v1352_v21 = vld [vmem:[#allocation2 + $0x20] sm:$0xff] }
  0x5c   : > { %v315_v24 = vrot.slane %v1337_v10, 7  ;;  %v316_v25 = vrot.slane %v1344_v16, 7  ;;  %vm320_vm0 = vcmp.lt.s32.totalorder %v1347_v17, 1  ;;  %vm345_vm1 = vcmp.lt.s32.totalorder %v1347_v17, 7  ;;  %v1374_v36 = vld [vmem:[#allocation2 + $0x38] sm:$0xff]  ;;  %v1385_v48 = vld [vmem:[#allocation2 + $0x28] sm:$0xff] }
  0x5d   : > { %v341_v26 = vrot.slane %v1344_v16, 1  ;;  %v342_v27 = vrot.slane %v1352_v21, 1  ;;  %v326_v28 = vsel %vm320_vm0, %v313_v12, %v314_v13  ;;  %v350_v29 = vsel %vm345_vm1, %v339_v14, %v340_v19  ;;  %s836_s0 = sshll.u32 %s705_s29, 7  ;;  %s1010_s12 = scalar_lea.vmem %s1665_s20, 1024 }
  0x5e   : > { %v327_v30 = vsel %vm320_vm0, %v312_v20, %v313_v12  ;;  %v351_v31 = vsel %vm345_vm1, %v338_v23, %v339_v14  ;;  %v364_v32 = vadd.f32 %v350_v29, %v326_v28  ;;  %v324_v34 = vsel %vm320_vm0, %v315_v24, %v316_v25  ;;  %s1672_s1 = scalar_lea.hbm %s1741_s3, %s836_s0  ;;  %p1011_p7 = scmp.ne.s32.totalorder %s1665_s20, %s1010_s12 }
  0x5f   : > { %v363_v33 = vadd.f32 %v351_v31, %v327_v30  ;;  %v348_v35 = vsel %vm345_vm1, %v341_v26, %v342_v27  ;;  %v308_v37 = vmul.f32 0.5, %v1344_v16  ;;  %v325_v39 = vsel %vm320_vm0, %v314_v13, %v315_v24  ;;  %s1142_s17 = smov [#allocation9]  }
  0x60   : > { %v366_v38 = vadd.f32 %v348_v35, %v324_v34  ;;  %v349_v40 = vsel %vm345_vm1, %v340_v19, %v341_v26  ;;  %v372_v41 = vmul.f32 0.25, %v364_v32  ;;  %v307_v43 = vmul.f32 0.5, %v1337_v10  ;;  %p1012_p6 = pnand %p1011_p7, %p1250_p12  ;;  %s1014_s7 = sshll.u32 %s1142_s17, 4  ;;  %s1015_s7 = int_to_ptr.vmem [resolvable:$false] %s1014_s7 }
  0x61   : > { %v371_v42 = vmul.f32 0.25, %v363_v33  ;;  %v365_v44 = vadd.f32 %v349_v40, %v325_v39  ;;  %vm286_vm2 = vcmp.ne.s32.totalorder %v1347_v17, 0  ;;  %v319_v46 = vrot.slane %v1374_v36, 7  ;;  %s1016_s19 = scalar_lea.vmem %s1015_s7, 2048  ;;  %p1017_p8 = scmp.lt.s32.totalorder %s1665_s20, %s1015_s7 }
  0x62   : > { %v374_v45 = vmul.f32 0.25, %v366_v38  ;;  %v337_v47 = vrot.slane %v1342_v15, 1  ;;  %v1387_v49 = vadd.f32 %v372_v41, %v306_v18  ;;  %v1392_v52 = vadd.s32 56, %v1347_v17  ;;  %p1013_p1 = pneg %p1012_p6  ;;  %p1018_p9 = scmp.lt.s32.totalorder %s1016_s19, %s1010_s12 }
  0x63   : > { %v1389_v50 = vadd.f32 %v371_v42, %v305_v22  ;;  %v373_v51 = vmul.f32 0.25, %v365_v44  ;;  %v304_v53 = vmul.f32 0.5, %v1342_v15  ;;  %v328_v54 = vsel %vm320_vm0, %v319_v46, %v312_v20 }
  0x64   : > { %v352_v55 = vsel %vm345_vm1, %v337_v47, %v338_v23  ;;  %398 = vrot.lane.b32.xlu1 %v1387_v49, %s1140_s5  ;;  %v1403_v56 = vadd.f32 %v374_v45, %v308_v37  ;;  %v329_v58 = vsel %vm286_vm2, %v328_v54, 0.0  ;;  %v318_v59 = vrot.slane %v1385_v48, 7  ;;  %v466_v45 = vld [vmem:[%s1321_s24] sm:$0xff]  ;;  %p1019_p10 = por %p1018_p9, %p1017_p8 }
  0x65   : > { %396 = vrot.lane.b32.xlu0 %v1389_v50, %s1140_s5  ;;  %v1405_v57 = vadd.f32 %v373_v51, %v307_v43  ;;  %v362_v60 = vadd.f32 %v352_v55, %v329_v58  ;;  %vm301_vm3 = vcmp.ne.s32.totalorder %v1392_v52, 63  ;;  %v344_v61 = vrot.slane %v1374_v36, 1 }
  0x66   : > { %v317_v62 = vrot.slane %v1352_v21, 7  ;;  %v321_v63 = vsel %vm320_vm0, %v318_v59, %v319_v46  ;;  %v343_v0 = vrot.slane %v1385_v48, 1  ;;  %v311_v5 = vmul.f32 0.5, %v1374_v36  ;;  %p1020_p3 = pnand %p1019_p10, %p1013_p1 }
  0x67   : > { %v370_v1 = vmul.f32 0.25, %v362_v60  ;;  %v353_v2 = vsel %vm345_vm1, %v344_v61, %v337_v47  ;;  %v310_v22 = vmul.f32 0.5, %v1385_v48  ;;  %v309_v24 = vmul.f32 0.5, %v1352_v21 }
  0x68   : > { %v322_v3 = vsel %vm320_vm0, %v317_v62, %v318_v59  ;;  %v323_v4 = vsel %vm320_vm0, %v316_v25, %v317_v62  ;;  %402 = vrot.lane.b32.xlu1 %v1403_v56, %s1140_s5  ;;  %v361_v6 = vsel %vm301_vm3, %v353_v2, 0.0  ;;  %v346_v7 = vsel %vm345_vm1, %v343_v0, %v344_v61  ;;  %v473_v59 = vld [vmem:[%s1321_s24 + $0x38] sm:$0xff] }
  0x69   : > { %400 = vrot.lane.b32.xlu0 %v1405_v57, %s1140_s5  ;;  %v347_v12 = vsel %vm345_vm1, %v342_v27, %v343_v0  ;;  %v378_v13 = vadd.f32 %v370_v1, %v304_v53  ;;  %v369_v14 = vadd.f32 %v361_v6, %v321_v63  ;;  %v368_v18 = vadd.f32 %v346_v7, %v322_v3 }
  0x6a   : > { %v367_v19 = vadd.f32 %v347_v12, %v323_v4  ;;  %v1460_v31 = vand.u32 127, %v275_v11  ;;  %v388_v61 = vmul.f32 0.5, %v1387_v49  ;;  %v387_v2 = vmul.f32 0.5, %v1389_v50 }
  0x6b   : > { %v377_v20 = vmul.f32 0.25, %v369_v14  ;;  %v376_v23 = vmul.f32 0.25, %v368_v18  ;;  %v386_v39 = vmul.f32 0.5, %v378_v13 }
  0x6c   : > { %418 = vrot.lane.b32.xlu1 %v378_v13, %s1141_s6  ;;  %v375_v25 = vmul.f32 0.25, %v367_v19  ;;  %vm303_vm4 = vcmp.ne.s32.totalorder %v1460_v31, 127  ;;  %vm302_vm5 = vcmp.ne.s32.totalorder %v1460_v31, 0 }
  0x6d   : > { %394 = vrot.lane.b32.xlu0 %v378_v13, %s1140_s5  ;;  %v385_v26 = vadd.f32 %v377_v20, %v311_v5  ;;  %v1439_v27 = vadd.f32 %v376_v23, %v310_v22 }
  0x6e   : > { %v1441_v28 = vadd.f32 %v375_v25, %v309_v24 }
  0x6f   : > { %v393_v47 = vmul.f32 0.5, %v385_v26 }
  0x70   : > { %432 = vrot.lane.b32.xlu1 %v385_v26, %s1141_s6 }
  0x71   : > { %408 = vrot.lane.b32.xlu0 %v385_v26, %s1140_s5  ;;  %v468_v26 = vld [vmem:[%s1321_s24 + $0x10] sm:$0xff] }
  0x74   : > { %406 = vrot.lane.b32.xlu1 %v1439_v27, %s1140_s5 }
  0x75   : > { %404 = vrot.lane.b32.xlu0 %v1441_v28, %s1140_s5 }
  0x78   : > { %422 = vrot.lane.b32.xlu1 %v1387_v49, %s1141_s6 }
  0x79   : > { %420 = vrot.lane.b32.xlu0 %v1389_v50, %s1141_s6 }
  0x7c   : > { %426 = vrot.lane.b32.xlu1 %v1403_v56, %s1141_s6 }
  0x7d   : > { %424 = vrot.lane.b32.xlu0 %v1405_v57, %s1141_s6 }
  0x80   : > { %430 = vrot.lane.b32.xlu1 %v1439_v27, %s1141_s6 }
  0x81   : > { %428 = vrot.lane.b32.xlu0 %v1441_v28, %s1141_s6 }
  0xd6   : > { %v399_v29 = vpop.permute.xlu1 %398 }
  0xd7   : > { %v397_v30 = vpop.permute.xlu0 %396  ;;  %v412_v62 = vsel %vm302_vm5, %v399_v29, 0.0  ;;  %v467_v29 = vld [vmem:[%s1321_s24 + $0x8] sm:$0xff] }
  0xd8   : > { %v411_v63 = vsel %vm302_vm5, %v397_v30, 0.0 }
  0xda   : > { %v403_v32 = vpop.permute.xlu1 %402 }
  0xdb   : > { %v401_v33 = vpop.permute.xlu0 %400  ;;  %v414_v24 = vsel %vm302_vm5, %v403_v32, 0.0  ;;  %v389_v32 = vmul.f32 0.5, %v1405_v57 }
  0xdc   : > { %v413_v25 = vsel %vm302_vm5, %v401_v33, 0.0 }
  0xde   : > { %v419_v34 = vpop.permute.xlu1 %418 }
  0xdf   : > { %v395_v35 = vpop.permute.xlu0 %394  ;;  %v434_v37 = vsel %vm303_vm4, %v419_v34, 0.0 }
  0xe0   : > { %v410_v38 = vsel %vm302_vm5, %v395_v35, 0.0 }
  0xe1   : > { %v442_v40 = vadd.f32 %v434_v37, %v410_v38 }
  0xe2   : > { %v433_v41 = vpop.permute.xlu1 %432 }
  0xe3   : > { %v450_v11 = vmul.f32 0.25, %v442_v40  ;;  %v409_v42 = vpop.permute.xlu0 %408  ;;  %v441_v43 = vsel %vm303_vm4, %v433_v41, 0.0  ;;  %v390_v40 = vmul.f32 0.5, %v1403_v56 }
  0xe4   : > { %v417_v44 = vsel %vm302_vm5, %v409_v42, 0.0 }
  0xe5   : > { %v458_v46 = vadd.f32 %v450_v11, %v386_v39  ;;  %v449_v51 = vadd.f32 %v441_v43, %v417_v44 }
  0xe6   : > { %v407_v54 = vpop.permute.xlu1 %406 }
  0xe7   : > { %v457_v53 = vmul.f32 0.25, %v449_v51  ;;  %v405_v55 = vpop.permute.xlu0 %404  ;;  %v1473_v58 = vsub.f32 %v458_v46, %v466_v45  ;;  %v416_v45 = vsel %vm302_vm5, %v407_v54, 0.0  ;;  %v392_v54 = vmul.f32 0.5, %v1439_v27 }
  0xe8   : > { %v415_v46 = vsel %vm302_vm5, %v405_v55, 0.0  ;;  %v391_v55 = vmul.f32 0.5, %v1441_v28 }
  0xe9   : > { %v465_v60 = vadd.f32 %v457_v53, %v393_v47  ;;  %v490_v4 = vrot.slane %v1473_v58, 7  ;;  %v514_v5 = vrot.slane %v1473_v58, 1 }
  0xea   : > { %v423_v1 = vpop.permute.xlu1 %422 }
  0xeb   : > { %v1481_v0 = vsub.f32 %v465_v60, %v473_v59  ;;  %v421_v3 = vpop.permute.xlu0 %420  ;;  %v436_v49 = vsel %vm303_vm4, %v423_v1, 0.0  ;;  %v470_v60 = vld [vmem:[%s1321_s24 + $0x20] sm:$0xff] }
  0xec   : > { %v435_v6 = vsel %vm303_vm4, %v421_v3, 0.0  ;;  %v444_v13 = vadd.f32 %v436_v49, %v412_v62 }
  0xed   : > { %v497_v7 = vrot.slane %v1481_v0, 7  ;;  %v521_v12 = vrot.slane %v1481_v0, 1  ;;  %v443_v14 = vadd.f32 %v435_v6, %v411_v63 }
  0xee   : > { %v452_v50 = vmul.f32 0.25, %v444_v13  ;;  %v427_v19 = vpop.permute.xlu1 %426 }
  0xef   : > { %v451_v18 = vmul.f32 0.25, %v443_v14  ;;  %v425_v20 = vpop.permute.xlu0 %424  ;;  %v505_v22 = vsel %vm320_vm0, %v497_v7, %v490_v4  ;;  %v529_v23 = vsel %vm345_vm1, %v521_v12, %v514_v5  ;;  %v438_v30 = vsel %vm303_vm4, %v427_v19, 0.0 }
  0xf0   : > { %v437_v34 = vsel %vm303_vm4, %v425_v20, 0.0  ;;  %v460_v35 = vadd.f32 %v452_v50, %v388_v61  ;;  %v446_v38 = vadd.f32 %v438_v30, %v414_v24  ;;  %v469_v61 = vld [vmem:[%s1321_s24 + $0x18] sm:$0xff]  ;;  %v482_v19 = vmul.f32 0.5, %v1473_v58 }
  0xf1   : > { %v459_v37 = vadd.f32 %v451_v18, %v387_v2  ;;  %v445_v39 = vadd.f32 %v437_v34, %v413_v25  ;;  %v506_v27 = vsel %vm286_vm2, %v505_v22, 0.0 }
  0xf2   : > { %v476_v11 = vsub.f32 %v460_v35, %v468_v26  ;;  %v454_v41 = vmul.f32 0.25, %v446_v38  ;;  %v431_v43 = vpop.permute.xlu1 %430 }
  0xf3   : > { %v475_v33 = vsub.f32 %v459_v37, %v467_v29  ;;  %v453_v42 = vmul.f32 0.25, %v445_v39  ;;  %v429_v44 = vpop.permute.xlu0 %428  ;;  %v440_v47 = vsel %vm303_vm4, %v431_v43, 0.0  ;;  %v471_v29 = vld [vmem:[%s1321_s24 + $0x28] sm:$0xff]  ;;  %v537_v37 = vsel %vm301_vm3, %v529_v23, 0.0 }
  0xf4   : > { %v439_v56 = vsel %vm303_vm4, %v429_v44, 0.0  ;;  %v492_v57 = vrot.slane %v476_v11, 7  ;;  %v516_v51 = vrot.slane %v476_v11, 1  ;;  %v462_v62 = vadd.f32 %v454_v41, %v390_v40 }
  0xf5   : > { %v491_v53 = vrot.slane %v475_v33, 7  ;;  %v515_v59 = vrot.slane %v475_v33, 1  ;;  %v461_v63 = vadd.f32 %v453_v42, %v389_v32  ;;  %v448_v1 = vadd.f32 %v440_v47, %v416_v45 }
  0xf6   : > { %v447_v2 = vadd.f32 %v439_v56, %v415_v46  ;;  %v478_v6 = vsub.f32 %v462_v62, %v470_v60  ;;  %v484_v35 = vmul.f32 0.5, %v476_v11  ;;  %v483_v42 = vmul.f32 0.5, %v475_v33 }
  0xf7   : > { %v503_v3 = vsel %vm320_vm0, %v491_v53, %v492_v57  ;;  %v504_v49 = vsel %vm320_vm0, %v490_v4, %v491_v53  ;;  %v477_v13 = vsub.f32 %v461_v63, %v469_v61  ;;  %v456_v14 = vmul.f32 0.25, %v448_v1  ;;  %v472_v4 = vld [vmem:[%s1321_s24 + $0x30] sm:$0xff] }
  0xf8   : > { %v455_v50 = vmul.f32 0.25, %v447_v2  ;;  %v527_v18 = vsel %vm345_vm1, %v515_v59, %v516_v51  ;;  %v528_v28 = vsel %vm345_vm1, %v514_v5, %v515_v59  ;;  %v494_v20 = vrot.slane %v478_v6, 7 }
  0xf9   : > { %v518_v24 = vrot.slane %v478_v6, 1  ;;  %v493_v25 = vrot.slane %v477_v13, 7  ;;  %v517_v26 = vrot.slane %v477_v13, 1  ;;  %v464_v30 = vadd.f32 %v456_v14, %v392_v54 }
  0xfa   : > { %v463_v34 = vadd.f32 %v455_v50, %v391_v55  ;;  %v485_v11 = vmul.f32 0.5, %v477_v13  ;;  %v539_v52 = vadd.f32 %v527_v18, %v504_v49  ;;  %v538_v23 = vadd.f32 %v528_v28, %v506_v27 }
  0xfb   : > { %v526_v58 = vsel %vm345_vm1, %v516_v51, %v517_v26  ;;  %v502_v22 = vsel %vm320_vm0, %v492_v57, %v493_v25  ;;  %v525_v5 = vsel %vm345_vm1, %v517_v26, %v518_v24  ;;  %v501_v38 = vsel %vm320_vm0, %v493_v25, %v494_v20 }
  0xfc   : > { %v480_v39 = vsub.f32 %v464_v30, %v472_v4  ;;  %v479_v40 = vsub.f32 %v463_v34, %v471_v29  ;;  %v540_v32 = vadd.f32 %v526_v58, %v503_v3  ;;  %v541_v41 = vadd.f32 %v525_v5, %v502_v22 }
  0xfd   : > { %v486_v57 = vmul.f32 0.5, %v478_v6  ;;  %v547_v54 = vmul.f32 0.25, %v539_v52  ;;  %v546_v55 = vmul.f32 0.25, %v538_v23 }
  0xfe   : > { %v496_v43 = vrot.slane %v480_v39, 7  ;;  %v520_v44 = vrot.slane %v480_v39, 1  ;;  %v495_v45 = vrot.slane %v479_v40, 7  ;;  %v519_v46 = vrot.slane %v479_v40, 1 }
  0xff   : > { %v548_v47 = vmul.f32 0.25, %v540_v32  ;;  %v549_v56 = vmul.f32 0.25, %v541_v41  ;;  %v487_v51 = vmul.f32 0.5, %v479_v40  ;;  %v488_v50 = vmul.f32 0.5, %v480_v39 }
 0x100   : > { %v524_v53 = vsel %vm345_vm1, %v518_v24, %v519_v46  ;;  %v500_v59 = vsel %vm320_vm0, %v494_v20, %v495_v45  ;;  %v523_v60 = vsel %vm345_vm1, %v519_v46, %v520_v44  ;;  %v499_v33 = vsel %vm320_vm0, %v495_v45, %v496_v43 }
 0x101   : > { %v556_v61 = vadd.f32 %v548_v47, %v484_v35  ;;  %v557_v62 = vadd.f32 %v549_v56, %v485_v11  ;;  %v542_v63 = vadd.f32 %v524_v53, %v501_v38  ;;  %v543_v1 = vadd.f32 %v523_v60, %v500_v59 }
 0x102   : > { %v522_v2 = vsel %vm345_vm1, %v520_v44, %v521_v12  ;;  %v498_v3 = vsel %vm320_vm0, %v496_v43, %v497_v7  ;;  %v1565_v18 = vadd.f32 %v547_v54, %v483_v42  ;;  %v1567_v27 = vadd.f32 %v546_v55, %v482_v19 }
 0x103   : > { %574 = vrot.lane.b32.xlu0 %v556_v61, %s1140_s5  ;;  %576 = vrot.lane.b32.xlu1 %v557_v62, %s1140_s5  ;;  %v550_v49 = vmul.f32 0.25, %v542_v63  ;;  %v551_v6 = vmul.f32 0.25, %v543_v1  ;;  %v544_v13 = vadd.f32 %v522_v2, %v499_v33  ;;  %v545_v14 = vadd.f32 %v537_v37, %v498_v3 }
 0x104   : > { %v489_v12 = vmul.f32 0.5, %v1481_v0  ;;  %v565_v38 = vmul.f32 0.5, %v557_v62  ;;  %v645_v39 = vmul.f32 0.002, %v1337_v10  ;;  %v1605_v40 = vstv %s658_s4 }
 0x105   : > { %v558_v28 = vadd.f32 %v550_v49, %v486_v57  ;;  %v559_v20 = vadd.f32 %v551_v6, %v487_v51  ;;  %v552_v24 = vmul.f32 0.25, %v544_v13  ;;  %v553_v17 = vmul.f32 0.25, %v545_v14 }
 0x106   : > { %v564_v41 = vmul.f32 0.5, %v556_v61  ;;  %v644_v11 = vmul.f32 0.002, %v1335_v9  ;;  %v647_v53 = vmul.f32 0.002, %v1352_v21 }
 0x107   : > { %578 = vrot.lane.b32.xlu0 %v558_v28, %s1140_s5  ;;  %580 = vrot.lane.b32.xlu1 %v559_v20, %s1140_s5  ;;  %v1572_v7 = vadd.f32 %v552_v24, %v488_v50  ;;  %v1574_v25 = vadd.f32 %v553_v17, %v489_v12  ;;  %v567_v59 = vmul.f32 0.5, %v559_v20  ;;  %v566_v60 = vmul.f32 0.5, %v558_v28 }
 0x108   : > { %v646_v33 = vmul.f32 0.002, %v1344_v16 }
 0x10b   : > { %598 = vrot.lane.b32.xlu0 %v556_v61, %s1141_s6  ;;  %600 = vrot.lane.b32.xlu1 %v557_v62, %s1141_s6 }
 0x10f   : > { %602 = vrot.lane.b32.xlu0 %v558_v28, %s1141_s6  ;;  %604 = vrot.lane.b32.xlu1 %v559_v20, %s1141_s6 }
 0x113   : > { %582 = vrot.lane.b32.xlu0 %v1572_v7, %s1140_s5  ;;  %572 = vrot.lane.b32.xlu1 %v1565_v18, %s1140_s5 }
 0x117   : > { %596 = vrot.lane.b32.xlu1 %v1565_v18, %s1141_s6  ;;  %570 = vrot.lane.b32.xlu0 %v1567_v27, %s1140_s5 }
 0x11b   : > { %584 = vrot.lane.b32.xlu1 %v1574_v25, %s1140_s5  ;;  %594 = vrot.lane.b32.xlu0 %v1567_v27, %s1141_s6 }
 0x11f   : > { %608 = vrot.lane.b32.xlu1 %v1574_v25, %s1141_s6  ;;  %606 = vrot.lane.b32.xlu0 %v1572_v7, %s1141_s6 }
 0x175   : > { %v577_v0 = vpop.permute.xlu1 %576  ;;  %v575_v19 = vpop.permute.xlu0 %574 }
 0x176   : > { %v589_v34 = vsel %vm302_vm5, %v577_v0, 0.0  ;;  %v588_v35 = vsel %vm302_vm5, %v575_v19, 0.0  ;;  %v563_v19 = vmul.f32 0.5, %v1565_v18 }
 0x179   : > { %v581_v26 = vpop.permute.xlu1 %580  ;;  %v579_v4 = vpop.permute.xlu0 %578 }
 0x17a   : > { %v591_v43 = vsel %vm302_vm5, %v581_v26, 0.0  ;;  %v590_v44 = vsel %vm302_vm5, %v579_v4, 0.0 }
 0x17d   : > { %v601_v29 = vpop.permute.xlu1 %600  ;;  %v599_v30 = vpop.permute.xlu0 %598 }
 0x17e   : > { %v613_v37 = vsel %vm303_vm4, %v601_v29, 0.0  ;;  %v612_v58 = vsel %vm303_vm4, %v599_v30, 0.0  ;;  %v643_v29 = vmul.f32 0.002, %v1333_v8 }
 0x17f   : > { %v621_v22 = vadd.f32 %v613_v37, %v589_v34  ;;  %v620_v5 = vadd.f32 %v612_v58, %v588_v35 }
 0x181   : > { %v629_v32 = vmul.f32 0.25, %v621_v22  ;;  %v628_v42 = vmul.f32 0.25, %v620_v5  ;;  %v605_v52 = vpop.permute.xlu1 %604  ;;  %v603_v23 = vpop.permute.xlu0 %602 }
 0x182   : > { %v615_v45 = vsel %vm303_vm4, %v605_v52, 0.0  ;;  %v614_v46 = vsel %vm303_vm4, %v603_v23, 0.0 }
 0x183   : > { %v637_v47 = vadd.f32 %v629_v32, %v565_v38  ;;  %v636_v56 = vadd.f32 %v628_v42, %v564_v41  ;;  %v623_v57 = vadd.f32 %v615_v45, %v591_v43  ;;  %v622_v51 = vadd.f32 %v614_v46, %v590_v44 }
 0x184   : > { %v642_v38 = vmul.f32 0.002, %v1342_v15  ;;  %v568_v41 = vmul.f32 0.5, %v1572_v7  ;;  %v649_v7 = vmul.f32 0.002, %v1374_v36 }
 0x185   : > { %v653_v61 = vadd.f32 %v645_v39, %v637_v47  ;;  %v652_v62 = vadd.f32 %v644_v11, %v636_v56  ;;  %v631_v63 = vmul.f32 0.25, %v623_v57  ;;  %v630_v1 = vmul.f32 0.25, %v622_v51  ;;  %v583_v2 = vpop.permute.xlu0 %582  ;;  %v573_v54 = vpop.permute.xlu1 %572 }
 0x186   : > { %v587_v24 = vsel %vm302_vm5, %v573_v54, 0.0  ;;  %v592_v42 = vsel %vm302_vm5, %v583_v2, 0.0  ;;  %v648_v46 = vmul.f32 0.002, %v1385_v48 }
 0x187   : > { %v663_v55 = vmul.f32 %v1605_v40, %v653_v61  ;;  %v662_v3 = vmul.f32 %v1605_v40, %v652_v62  ;;  %v639_v49 = vadd.f32 %v631_v63, %v567_v59  ;;  %v638_v6 = vadd.f32 %v630_v1, %v566_v60 }
 0x189   : > { %v671_v13 = vsub.f32 %v1337_v10, %v663_v55  ;;  %v670_v14 = vsub.f32 %v1335_v9, %v662_v3  ;;  %v655_v50 = vadd.f32 %v647_v53, %v639_v49  ;;  %v654_v12 = vadd.f32 %v646_v33, %v638_v6  ;;  %v597_v28 = vpop.permute.xlu1 %596  ;;  %v571_v20 = vpop.permute.xlu0 %570 }
 0x18a   : > { %v611_v17 = vsel %vm303_vm4, %v597_v28, 0.0  ;;  %v586_v37 = vsel %vm302_vm5, %v571_v20, 0.0 }
 0x18b   : > { %679 = vst [vmem:[#allocation2 + $0x10] sm:$0xff] %v671_v13  ;;  %687 = vst [vmem:[%s1330_s13 + $0x18] sm:$0xff] %v671_v13  ;;  %v665_v10 = vmul.f32 %v1605_v40, %v655_v50  ;;  %v664_v9 = vmul.f32 %v1605_v40, %v654_v12  ;;  %v619_v0 = vadd.f32 %v611_v17, %v587_v24 }
 0x18c   : > { %678 = vst [vmem:[#allocation2 + $0x18] sm:$0xff] %v670_v14  ;;  %686 = vst [vmem:[%s1330_s13 + $0x10] sm:$0xff] %v670_v14 }
 0x18d   : > { %v673_v26 = vsub.f32 %v1352_v21, %v665_v10  ;;  %v672_v4 = vsub.f32 %v1344_v16, %v664_v9  ;;  %v627_v30 = vmul.f32 0.25, %v619_v0  ;;  %v585_v34 = vpop.permute.xlu1 %584  ;;  %v595_v35 = vpop.permute.xlu0 %594  ;;  %v562_v21 = vmul.f32 0.5, %v1567_v27 }
 0x18e   : > { %v610_v58 = vsel %vm303_vm4, %v595_v35, 0.0  ;;  %v569_v16 = vmul.f32 0.5, %v1574_v25  ;;  %v593_v52 = vsel %vm302_vm5, %v585_v34, 0.0 }
 0x18f   : > { %681 = vst [vmem:[#allocation2 + $0x20] sm:$0xff] %v673_v26  ;;  %689 = vst [vmem:[%s1330_s13 + $0x28] sm:$0xff] %v673_v26  ;;  %v635_v18 = vadd.f32 %v627_v30, %v563_v19  ;;  %v618_v22 = vadd.f32 %v610_v58, %v586_v37 }
 0x190   : > { %680 = vst [vmem:[#allocation2 + $0x8] sm:$0xff] %v672_v4  ;;  %688 = vst [vmem:[%s1330_s13 + $0x20] sm:$0xff] %v672_v4 }
 0x191   : > { %v651_v5 = vadd.f32 %v643_v29, %v635_v18  ;;  %v626_v39 = vmul.f32 0.25, %v618_v22  ;;  %v609_v32 = vpop.permute.xlu1 %608  ;;  %v607_v11 = vpop.permute.xlu0 %606 }
 0x192   : > { %v617_v27 = vsel %vm303_vm4, %v609_v32, 0.0  ;;  %v616_v25 = vsel %vm303_vm4, %v607_v11, 0.0 }
 0x193   : > { %v661_v23 = vmul.f32 %v1605_v40, %v651_v5  ;;  %v634_v43 = vadd.f32 %v626_v39, %v562_v21  ;;  %v625_v44 = vadd.f32 %v617_v27, %v593_v52  ;;  %v624_v45 = vadd.f32 %v616_v25, %v592_v42 }
 0x195   : > { %v669_v47 = vsub.f32 %v1333_v8, %v661_v23  ;;  %v650_v56 = vadd.f32 %v642_v38, %v634_v43  ;;  %v633_v57 = vmul.f32 0.25, %v625_v44  ;;  %v632_v51 = vmul.f32 0.25, %v624_v45 }
 0x197   : > { %677 = vst [vmem:[#allocation2] sm:$0xff] %v669_v47  ;;  %685 = vst [vmem:[%s1330_s13 + $0x8] sm:$0xff] %v669_v47  ;;  %v660_v31 = vmul.f32 %v1605_v40, %v650_v56  ;;  %v641_v53 = vadd.f32 %v633_v57, %v569_v16  ;;  %v640_v59 = vadd.f32 %v632_v51, %v568_v41 }
 0x199   : > { %v668_v60 = vsub.f32 %v1342_v15, %v660_v31  ;;  %v657_v33 = vadd.f32 %v649_v7, %v641_v53  ;;  %v656_v61 = vadd.f32 %v648_v46, %v640_v59 }
 0x19b   : > { %676 = vst [vmem:[#allocation2 + $0x30] sm:$0xff] %v668_v60  ;;  %684 = vst [vmem:[%s1330_s13] sm:$0xff] %v668_v60  ;;  %v667_v8 = vmul.f32 %v1605_v40, %v657_v33  ;;  %v666_v62 = vmul.f32 %v1605_v40, %v656_v61 }
 0x19d   : > { %v675_v63 = vsub.f32 %v1374_v36, %v667_v8  ;;  %v674_v15 = vsub.f32 %v1385_v48, %v666_v62 }
 0x19f   : > { %683 = vst [vmem:[#allocation2 + $0x38] sm:$0xff] %v675_v63  ;;  %691 = vst [vmem:[%s1330_s13 + $0x38] sm:$0xff] %v675_v63 }
 0x1a0   : > { %682 = vst [vmem:[#allocation2 + $0x28] sm:$0xff] %v674_v15  ;;  %690 = vst [vmem:[%s1330_s13 + $0x30] sm:$0xff] %v674_v15 }
 0x1a1   : > { %1023 = shalt.err (!%p1020_p3)
}
 0x1a2   : > { %s1024_s24 = scalar_lea.hbm %s1672_s1, 1024  ;;  %s1028_s13 = scalar_lea.hbm %s1741_s3, 6144 }
 0x1a3   : > { %p1025_p11 = scmp.ne.s32.totalorder %s1672_s1, %s1024_s24  ;;  %p1029_p0 = scmp.lt.s32.totalorder %s1672_s1, %s1741_s3 }
 0x1a4   : > { %p1030_p4 = scmp.lt.s32.totalorder %s1028_s13, %s1024_s24 }
 0x1a5   : > { %p1026_p5 = pnand %p1025_p11, %p1250_p12 }
 0x1a6   : > { %p1031_p7 = por %p1030_p4, %p1029_p0 }
 0x1a7   : > { %p1027_p13 = pneg %p1026_p5 }
 0x1a9   : > { %p1032_p6 = pnand %p1031_p7, %p1027_p13 }
 0x1ab   : > { %1035 = shalt.err (!%p1032_p6)
}
 0x1ac   : > { %s1143_s4 = smov 128   ;;  %s1144_s27 = smov 8  }
 0x1ad   : > { %845 = dma.vmem_to_hbm [thread:$0]  (%p1250_p12), %s1665_s20, 1024, %s1672_s1, %s1678_s26, %s1143_s4, %s1143_s4, %s1144_s27  }
 0x1ae PF: > { %p859_p1 = scmp.ge.s32.totalorder %s1134_s23, 2  ;;  %s723_s28 = sand.u32 1, %s1094_s14  }
 0x1af   : > { %s724_s29 = scalar_lea.sflag [#allocation6], %s723_s28 }
 0x1b0   : > { %p855_p8 = pnand %p859_p1, %p1263_p2 }
 0x1b2   : > { %p856_p9 = pneg %p855_p8 }
 0x1b4   : > { %1089 = dma.done.wait (%p856_p9), %s724_s29, 1024  }
 0x1b5   : > { %1091 = vsyncadd (%p856_p9), %s724_s29, 4294966272  ;;  %s23_s23 = sadd.s32 1, %s1134_s23   ;;  %s1761_s8 = sld [smem:[#allocation13_spill]] }
 0x1b6   : > { %p20_p10 = scmp.ge.s32.totalorder %s23_s23, 8   ;;  %s1762_s19 = sld [smem:[#allocation17_spill]] }
 0x1b7   : > { %s1763_s20 = sld [smem:[#allocation14_spill]]  ;;  %s1766_s14 = smov %s1098_s15 }
 0x1b8   : > { %s1764_s21 = sld [smem:[#allocation15_spill]]  ;;  %s1767_s15 = smov %s1102_s16 }
 0x1b9   : > { %s1765_s30 = sld [smem:[#allocation16_spill]]  ;;  %s1768_s16 = smov %s1258_s10 }
 0x1ba   : > { %s1769_s17 = smov %s1110_s18  ;;  %s1771_s0 = smov %s1130_s22 }
 0x1bb   : > { %s1770_s18 = smov %s1761_s8  ;;  %22 = sbr.rel (!%p20_p10) target bundleno = 14 (0xe), region = 94 }
 0x1bf   : > { %s1772_s22 = smov %s1765_s30 }
 0x1c0   :  { %729 = vsyncpa [#allocation5], 1 }
 0x1c1   :  { %731 = vsyncpa [#allocation5 + $0x1], 1 }
 0x1c2   :  { %732 = vsyncpa [#allocation8], 1 }
 0x1c3   :  { %734 = vsyncpa [#allocation8 + $0x1], 1 }
 0x1c4   :  { %735 = vsyncpa [#allocation6], 1 }
 0x1c5   :  { %737 = vsyncpa [#allocation6 + $0x1], 1 }

</bundles_post_ra>
